<compile_context>
chip_gen: v6e
topology: v6e:2x2x1
jax: 0.10.0
libtpu: 0.0.40
codegen_flags: <defaults>
</compile_context>

<pallas_src>
import functools

import jax
import jax.numpy as jnp
from jax.experimental import pallas as pl
from jax.experimental.pallas import tpu as pltpu


def _upsample_conv3x3_kernel(x_ref, g_ref, m_ref, w_ref, b_ref, o_ref, xstack_ref,
                             *, Hy, Wy, Nb, cin_pad):
    # x_ref:      (Nb, cin_pad, Hx*Wx)  bf16 low-res input (channels zero-padded)
    # g_ref:      (Hx*Wx, HW)           bf16 one-hot nearest-gather matrix
    # m_ref:      (9*cin_pad, L)        f32 0/1 border masks, scratch-row layout
    # w_ref:      (Cout, 9*cin_pad)     bf16 weights, tap-major, padded cols zeroed
    # b_ref:      (Cout, 1)             f32 bias
    # o_ref:      (Nb, Cout, HW)        output block (f32 or bf16)
    # xstack_ref: (9*cin_pad, L)        f32 VMEM scratch holding the stacked taps
    HW = Hy * Wy
    L = Nb * HW

    g = g_ref[...]                                              # (HxWx, HW) bf16

    # ---- fused nearest upsample: one small MXU matmul per image, lane-concat ----
    ups = [jnp.dot(x_ref[b], g, preferred_element_type=jnp.float32)   # (cin_pad, HW) f32
           for b in range(Nb)]
    xu = ups[0] if Nb == 1 else jnp.concatenate(ups, axis=1)    # (cin_pad, L) f32

    # ---- 9 conv taps: lane roll (XLU) + one aligned f32 mask multiply each,
    #      streamed into the (8,128)-aligned stacking scratch ----
    for kh in range(3):
        for kw in range(3):
            t = kh * 3 + kw
            delta = (kh - 1) * Wy + (kw - 1)
            tap = pltpu.roll(xu, shift=(-delta) % L, axis=1) if delta != 0 else xu
            r0 = t * cin_pad
            r1 = r0 + cin_pad
            if kh == 1 and kw == 1:                             # center tap: mask is all-ones
                xstack_ref[r0:r1, :] = tap
            else:
                xstack_ref[r0:r1, :] = tap * m_ref[r0:r1, :]

    # ---- single K=9*cin_pad MXU matmul + bias, lane-dense store ----
    acc = jnp.dot(w_ref[...], xstack_ref[...].astype(jnp.bfloat16),
                  preferred_element_type=jnp.float32)           # (Cout, L) f32
    out = acc + b_ref[...]                                      # bias broadcast over lanes
    for b in range(Nb):
        o_ref[b] = out[:, b * HW:(b + 1) * HW].astype(o_ref.dtype)


def better_upsampling_forward(x, y, weight, bias, *, batch_block=None,
                              out_dtype=jnp.float32):
    """x: (N, Cin, Hx, Wx), y: (N, *, Hy, Wy), weight: (Cout, Cin, 3, 3), bias: (Cout,).
    Returns (N, Cout, Hy, Wy) in out_dtype (default f32, matching the PyTorch module;
    matmul operands are bf16 with f32 accumulation)."""
    N, Cin, Hx, Wx = x.shape
    Hy, Wy = int(y.shape[2]), int(y.shape[3])
    Cout = weight.shape[0]
    HW = Hy * Wy
    HxWx = Hx * Wx
    cin_pad = ((Cin + 7) // 8) * 8

    # Images per grid step: keep >=2 parallel grid steps (v7x has 2 TensorCores)
    # while doing more than one image of work per step when the batch allows it.
    if batch_block is None:
        batch_block = 2 if (N >= 4 and N % 2 == 0) else 1
    if N % batch_block != 0:
        batch_block = 1
    Nb = batch_block
    L = Nb * HW

    # PyTorch 'nearest' indexing (legacy, not 'nearest-exact'): src = (dst*in)//out.
    hi = jnp.minimum((jnp.arange(Hy) * Hx) // Hy, Hx - 1)
    wi = jnp.minimum((jnp.arange(Wy) * Wx) // Wy, Wx - 1)
    src = (hi[:, None] * Wx + wi[None, :]).reshape(HW)          # (HW,) int32
    gmat = (jnp.arange(HxWx)[:, None] == src[None, :]).astype(jnp.bfloat16)  # (HxWx, HW)

    # Border masks for the 9 taps, pre-broadcast to the exact scratch-row layout
    # (9*cin_pad rows) and tiled over the Nb images folded onto the lane axis.
    hpos = jnp.arange(HW) // Wy
    wpos = jnp.arange(HW) % Wy
    rows = []
    for kh in range(3):
        for kw in range(3):
            dh, dw = kh - 1, kw - 1
            valid = ((hpos + dh >= 0) & (hpos + dh < Hy)
                     & (wpos + dw >= 0) & (wpos + dw < Wy))
            rows.append(valid.astype(jnp.float32))
    m9 = jnp.stack(rows, 0)                                     # (9, HW)
    mask = jnp.broadcast_to(m9[:, None, :], (9, cin_pad, HW)).reshape(9 * cin_pad, HW)
    mask = jnp.tile(mask, (1, Nb))                              # (9*cin_pad, L)

    # Low-res input: bf16, channels zero-padded to a sublane multiple, spatial on lanes.
    x_low = x.astype(jnp.bfloat16).reshape(N, Cin, HxWx)
    x_low = jnp.pad(x_low, ((0, 0), (0, cin_pad - Cin), (0, 0)))

    # Weights: single lane-dense (Cout, 9*cin_pad) bf16 tile, tap-major,
    # zero padding columns; bias as (Cout, 1) f32.
    w_r = jnp.transpose(weight, (0, 2, 3, 1))                   # (Cout, 3, 3, Cin)
    w_r = jnp.pad(w_r, ((0, 0), (0, 0), (0, 0), (0, cin_pad - Cin)))
    w2d = w_r.reshape(Cout, 9 * cin_pad).astype(jnp.bfloat16)
    b2d = bias.reshape(Cout, 1).astype(jnp.float32)

    kernel = functools.partial(_upsample_conv3x3_kernel,
                               Hy=Hy, Wy=Wy, Nb=Nb, cin_pad=cin_pad)

    out_flat = pl.pallas_call(
        kernel,
        out_shape=jax.ShapeDtypeStruct((N, Cout, HW), out_dtype),
        grid_spec=pltpu.PrefetchScalarGridSpec(
            num_scalar_prefetch=0,
            grid=(N // Nb,),
            in_specs=[
                pl.BlockSpec((Nb, cin_pad, HxWx), lambda n: (n, 0, 0)),
                pl.BlockSpec((HxWx, HW), lambda n: (0, 0)),
                pl.BlockSpec((9 * cin_pad, L), lambda n: (0, 0)),
                pl.BlockSpec((Cout, 9 * cin_pad), lambda n: (0, 0)),
                pl.BlockSpec((Cout, 1), lambda n: (0, 0)),
            ],
            out_specs=pl.BlockSpec((Nb, Cout, HW), lambda n: (n, 0, 0)),
            scratch_shapes=[pltpu.VMEM((9 * cin_pad, L), jnp.float32)],
        ),
        compiler_params=pltpu.CompilerParams(
            dimension_semantics=("parallel",),
            vmem_limit_bytes=32 * 1024 * 1024,
        ),
    )(x_low, gmat, mask, w2d, b2d)

    # Free metadata reshape back to NCHW -- no transpose pass over HBM.
    return out_flat.reshape(N, Cout, Hy, Wy)


def _reference_forward(x, y, weight, bias):
    # Pure-JAX reference with the same bf16 rounding of inputs/weights
    # (bf16 x bf16 -> f32 products are exact, so only f32 summation order differs).
    Hy, Wy = y.shape[2], y.shape[3]
    Hx, Wx = x.shape[2], x.shape[3]
    hi = jnp.minimum((jnp.arange(Hy) * Hx) // Hy, Hx - 1)
    wi = jnp.minimum((jnp.arange(Wy) * Wx) // Wy, Wx - 1)
    xu = x.astype(jnp.bfloat16).astype(jnp.float32)[:, :, hi, :][:, :, :, wi]
    xp = jnp.pad(xu, ((0, 0), (0, 0), (1, 1), (1, 1)))
    out = jax.lax.conv_general_dilated(
        xp, weight.astype(jnp.bfloat16).astype(jnp.float32),
        window_strides=(1, 1), padding="VALID",
        dimension_numbers=("NCHW", "OIHW", "NCHW"),
        precision=jax.lax.Precision.HIGHEST)
    return out + bias.reshape(1, -1, 1, 1)


if __name__ == "__main__":
    key = jax.random.PRNGKey(0)
    k1, k2, k3, k4 = jax.random.split(key, 4)

    N, in_ch, out_ch = 4, 4, 8
    Hx, Wx = 8, 8        # low-res input
    Hy, Wy = 16, 16      # target spatial size taken from y

    x = jax.random.normal(k1, (N, in_ch, Hx, Wx), jnp.float32)
    y = jax.random.normal(k2, (N, in_ch, Hy, Wy), jnp.float32)

    # Deterministic Conv2d(in_ch, out_ch, 3) parameters (synthetic init).
    fan_in = in_ch * 3 * 3
    bound = 1.0 / (fan_in ** 0.5)
    weight = jax.random.uniform(k3, (out_ch, in_ch, 3, 3), jnp.float32, -bound, bound)
    bias = jax.random.uniform(k4, (out_ch,), jnp.float32, -bound, bound)

    out = better_upsampling_forward(x, y, weight, bias)
    out = jax.block_until_ready(out)

    ref = _reference_forward(x, y, weight, bias)
    assert out.shape == (N, out_ch, Hy, Wy), out.shape
    max_err = float(jnp.max(jnp.abs(out - ref)))
    assert max_err < 2e-4, f"mismatch vs reference: max abs err {max_err}"

    print("KERNEL_OK")
</pallas_src>

<mosaic_0001>
module attributes {stable_mosaic.version = 11 : i64} {
  func.func @_upsample_conv3x3_kernel(%arg0: i32, %arg1: memref<2x8x64xbf16, #tpu.memory_space<vmem>>, %arg2: memref<64x256xbf16, #tpu.memory_space<vmem>>, %arg3: memref<72x512xf32, #tpu.memory_space<vmem>>, %arg4: memref<8x72xbf16, #tpu.memory_space<vmem>>, %arg5: memref<8x1xf32, #tpu.memory_space<vmem>>, %arg6: memref<2x8x256xf32, #tpu.memory_space<vmem>>, %arg7: memref<72x512xf32, #tpu.memory_space<vmem>>) attributes {dimension_semantics = [#tpu.dimension_semantics<parallel>], iteration_bounds = array<i64: 2>, scalar_prefetch = 0 : i64, scratch_operands = 1 : i64, tpu.core_type = #tpu.core_type<tc>, window_params = [{transform_indices = @transform_0, window_bounds = array<i64: 2, 8, 64>}, {pipeline_mode = #tpu.pipeline_mode<synchronous>, transform_indices = @transform_1, window_bounds = array<i64: 64, 256>}, {pipeline_mode = #tpu.pipeline_mode<synchronous>, transform_indices = @transform_2, window_bounds = array<i64: 72, 512>}, {pipeline_mode = #tpu.pipeline_mode<synchronous>, transform_indices = @transform_3, window_bounds = array<i64: 8, 72>}, {pipeline_mode = #tpu.pipeline_mode<synchronous>, transform_indices = @transform_4, window_bounds = array<i64: 8, 1>}, {transform_indices = @transform_5, window_bounds = array<i64: 2, 8, 256>}]} {
    %c0 = arith.constant 0 : index
    %c0_0 = arith.constant 0 : index
    %0 = vector.load %arg2[%c0, %c0_0] : memref<64x256xbf16, #tpu.memory_space<vmem>>, vector<64x256xbf16>
    %c0_1 = arith.constant 0 : index
    %c0_2 = arith.constant 0 : index
    %c0_3 = arith.constant 0 : index
    %1 = vector.load %arg1[%c0_1, %c0_2, %c0_3] : memref<2x8x64xbf16, #tpu.memory_space<vmem>>, vector<1x8x64xbf16>
    %2 = vector.shape_cast %1 : vector<1x8x64xbf16> to vector<8x64xbf16>
    %cst = arith.constant dense<0.000000e+00> : vector<8x256xf32>
    %3 = tpu.matmul %2, %0, %cst {dimension_numbers = #tpu.dot_dimension_numbers<[1], [0], [0], [1], [0, 0, 1, 1], [], []>} : vector<8x64xbf16>, vector<64x256xbf16>, vector<8x256xf32> -> vector<8x256xf32>
    %c1 = arith.constant 1 : index
    %c0_4 = arith.constant 0 : index
    %c0_5 = arith.constant 0 : index
    %4 = vector.load %arg1[%c1, %c0_4, %c0_5] : memref<2x8x64xbf16, #tpu.memory_space<vmem>>, vector<1x8x64xbf16>
    %5 = vector.shape_cast %4 : vector<1x8x64xbf16> to vector<8x64xbf16>
    %cst_6 = arith.constant dense<0.000000e+00> : vector<8x256xf32>
    %6 = tpu.matmul %5, %0, %cst_6 {dimension_numbers = #tpu.dot_dimension_numbers<[1], [0], [0], [1], [0, 0, 1, 1], [], []>} : vector<8x64xbf16>, vector<64x256xbf16>, vector<8x256xf32> -> vector<8x256xf32>
    %7 = tpu.concatenate %3, %6 in 1 : vector<8x256xf32>, vector<8x256xf32> -> vector<8x512xf32>
    %c17_i32 = arith.constant 17 : i32
    %8 = tpu.dynamic_rotate %7 by %c17_i32 dim 1 : vector<8x512xf32>, i32 -> vector<8x512xf32>
    %c0_7 = arith.constant 0 : index
    %c0_8 = arith.constant 0 : index
    %9 = vector.load %arg3[%c0_7, %c0_8] : memref<72x512xf32, #tpu.memory_space<vmem>>, vector<8x512xf32>
    %10 = arith.mulf %8, %9 : vector<8x512xf32>
    %c0_9 = arith.constant 0 : index
    %c0_10 = arith.constant 0 : index
    %11 = vector.load %arg7[%c0_9, %c0_10] : memref<72x512xf32, #tpu.memory_space<vmem>>, vector<8x512xf32>
    tpu.vector_store %arg7[%c0_9, %c0_10], %10 {strides = array<i32>} : memref<72x512xf32, #tpu.memory_space<vmem>>, vector<8x512xf32>,
    %c16_i32 = arith.constant 16 : i32
    %12 = tpu.dynamic_rotate %7 by %c16_i32 dim 1 : vector<8x512xf32>, i32 -> vector<8x512xf32>
    %c8 = arith.constant 8 : index
    %c0_11 = arith.constant 0 : index
    %13 = vector.load %arg3[%c8, %c0_11] : memref<72x512xf32, #tpu.memory_space<vmem>>, vector<8x512xf32>
    %14 = arith.mulf %12, %13 : vector<8x512xf32>
    %c8_12 = arith.constant 8 : index
    %c0_13 = arith.constant 0 : index
    %15 = vector.load %arg7[%c8_12, %c0_13] : memref<72x512xf32, #tpu.memory_space<vmem>>, vector<8x512xf32>
    tpu.vector_store %arg7[%c8_12, %c0_13], %14 {strides = array<i32>} : memref<72x512xf32, #tpu.memory_space<vmem>>, vector<8x512xf32>,
    %c15_i32 = arith.constant 15 : i32
    %16 = tpu.dynamic_rotate %7 by %c15_i32 dim 1 : vector<8x512xf32>, i32 -> vector<8x512xf32>
    %c16 = arith.constant 16 : index
    %c0_14 = arith.constant 0 : index
    %17 = vector.load %arg3[%c16, %c0_14] : memref<72x512xf32, #tpu.memory_space<vmem>>, vector<8x512xf32>
    %18 = arith.mulf %16, %17 : vector<8x512xf32>
    %c16_15 = arith.constant 16 : index
    %c0_16 = arith.constant 0 : index
    %19 = vector.load %arg7[%c16_15, %c0_16] : memref<72x512xf32, #tpu.memory_space<vmem>>, vector<8x512xf32>
    tpu.vector_store %arg7[%c16_15, %c0_16], %18 {strides = array<i32>} : memref<72x512xf32, #tpu.memory_space<vmem>>, vector<8x512xf32>,
    %c1_i32 = arith.constant 1 : i32
    %20 = tpu.dynamic_rotate %7 by %c1_i32 dim 1 : vector<8x512xf32>, i32 -> vector<8x512xf32>
    %c24 = arith.constant 24 : index
    %c0_17 = arith.constant 0 : index
    %21 = vector.load %arg3[%c24, %c0_17] : memref<72x512xf32, #tpu.memory_space<vmem>>, vector<8x512xf32>
    %22 = arith.mulf %20, %21 : vector<8x512xf32>
    %c24_18 = arith.constant 24 : index
    %c0_19 = arith.constant 0 : index
    %23 = vector.load %arg7[%c24_18, %c0_19] : memref<72x512xf32, #tpu.memory_space<vmem>>, vector<8x512xf32>
    tpu.vector_store %arg7[%c24_18, %c0_19], %22 {strides = array<i32>} : memref<72x512xf32, #tpu.memory_space<vmem>>, vector<8x512xf32>,
    %c32 = arith.constant 32 : index
    %c0_20 = arith.constant 0 : index
    %24 = vector.load %arg7[%c32, %c0_20] : memref<72x512xf32, #tpu.memory_space<vmem>>, vector<8x512xf32>
    tpu.vector_store %arg7[%c32, %c0_20], %7 {strides = array<i32>} : memref<72x512xf32, #tpu.memory_space<vmem>>, vector<8x512xf32>,
    %c511_i32 = arith.constant 511 : i32
    %25 = tpu.dynamic_rotate %7 by %c511_i32 dim 1 : vector<8x512xf32>, i32 -> vector<8x512xf32>
    %c40 = arith.constant 40 : index
    %c0_21 = arith.constant 0 : index
    %26 = vector.load %arg3[%c40, %c0_21] : memref<72x512xf32, #tpu.memory_space<vmem>>, vector<8x512xf32>
    %27 = arith.mulf %25, %26 : vector<8x512xf32>
    %c40_22 = arith.constant 40 : index
    %c0_23 = arith.constant 0 : index
    %28 = vector.load %arg7[%c40_22, %c0_23] : memref<72x512xf32, #tpu.memory_space<vmem>>, vector<8x512xf32>
    tpu.vector_store %arg7[%c40_22, %c0_23], %27 {strides = array<i32>} : memref<72x512xf32, #tpu.memory_space<vmem>>, vector<8x512xf32>,
    %c497_i32 = arith.constant 497 : i32
    %29 = tpu.dynamic_rotate %7 by %c497_i32 dim 1 : vector<8x512xf32>, i32 -> vector<8x512xf32>
    %c48 = arith.constant 48 : index
    %c0_24 = arith.constant 0 : index
    %30 = vector.load %arg3[%c48, %c0_24] : memref<72x512xf32, #tpu.memory_space<vmem>>, vector<8x512xf32>
    %31 = arith.mulf %29, %30 : vector<8x512xf32>
    %c48_25 = arith.constant 48 : index
    %c0_26 = arith.constant 0 : index
    %32 = vector.load %arg7[%c48_25, %c0_26] : memref<72x512xf32, #tpu.memory_space<vmem>>, vector<8x512xf32>
    tpu.vector_store %arg7[%c48_25, %c0_26], %31 {strides = array<i32>} : memref<72x512xf32, #tpu.memory_space<vmem>>, vector<8x512xf32>,
    %c496_i32 = arith.constant 496 : i32
    %33 = tpu.dynamic_rotate %7 by %c496_i32 dim 1 : vector<8x512xf32>, i32 -> vector<8x512xf32>
    %c56 = arith.constant 56 : index
    %c0_27 = arith.constant 0 : index
    %34 = vector.load %arg3[%c56, %c0_27] : memref<72x512xf32, #tpu.memory_space<vmem>>, vector<8x512xf32>
    %35 = arith.mulf %33, %34 : vector<8x512xf32>
    %c56_28 = arith.constant 56 : index
    %c0_29 = arith.constant 0 : index
    %36 = vector.load %arg7[%c56_28, %c0_29] : memref<72x512xf32, #tpu.memory_space<vmem>>, vector<8x512xf32>
    tpu.vector_store %arg7[%c56_28, %c0_29], %35 {strides = array<i32>} : memref<72x512xf32, #tpu.memory_space<vmem>>, vector<8x512xf32>,
    %c495_i32 = arith.constant 495 : i32
    %37 = tpu.dynamic_rotate %7 by %c495_i32 dim 1 : vector<8x512xf32>, i32 -> vector<8x512xf32>
    %c64 = arith.constant 64 : index
    %c0_30 = arith.constant 0 : index
    %38 = vector.load %arg3[%c64, %c0_30] : memref<72x512xf32, #tpu.memory_space<vmem>>, vector<8x512xf32>
    %39 = arith.mulf %37, %38 : vector<8x512xf32>
    %c64_31 = arith.constant 64 : index
    %c0_32 = arith.constant 0 : index
    %40 = vector.load %arg7[%c64_31, %c0_32] : memref<72x512xf32, #tpu.memory_space<vmem>>, vector<8x512xf32>
    tpu.vector_store %arg7[%c64_31, %c0_32], %39 {strides = array<i32>} : memref<72x512xf32, #tpu.memory_space<vmem>>, vector<8x512xf32>,
    %c0_33 = arith.constant 0 : index
    %c0_34 = arith.constant 0 : index
    %41 = vector.load %arg4[%c0_33, %c0_34] : memref<8x72xbf16, #tpu.memory_space<vmem>>, vector<8x72xbf16>
    %c0_35 = arith.constant 0 : index
    %c0_36 = arith.constant 0 : index
    %42 = vector.load %arg7[%c0_35, %c0_36] : memref<72x512xf32, #tpu.memory_space<vmem>>, vector<72x512xf32>
    %43 = arith.truncf %42 : vector<72x512xf32> to vector<72x512xbf16>
    %cst_37 = arith.constant dense<0.000000e+00> : vector<8x512xf32>
    %44 = tpu.matmul %41, %43, %cst_37 {dimension_numbers = #tpu.dot_dimension_numbers<[1], [0], [0], [1], [0, 0, 1, 1], [], []>} : vector<8x72xbf16>, vector<72x512xbf16>, vector<8x512xf32> -> vector<8x512xf32>
    %c0_38 = arith.constant 0 : index
    %c0_39 = arith.constant 0 : index
    %45 = vector.load %arg5[%c0_38, %c0_39] : memref<8x1xf32, #tpu.memory_space<vmem>>, vector<8x1xf32>
    %46 = vector.broadcast %45 : vector<8x1xf32> to vector<8x512xf32>
    %47 = arith.addf %44, %46 : vector<8x512xf32>
    %48 = vector.extract_strided_slice %47 {offsets = [0, 0], sizes = [8, 256], strides = [1, 1]} : vector<8x512xf32> to vector<8x256xf32>
    %c0_40 = arith.constant 0 : index
    %c0_41 = arith.constant 0 : index
    %c0_42 = arith.constant 0 : index
    %49 = vector.load %arg6[%c0_40, %c0_41, %c0_42] : memref<2x8x256xf32, #tpu.memory_space<vmem>>, vector<1x8x256xf32>
    %50 = vector.shape_cast %49 : vector<1x8x256xf32> to vector<8x256xf32>
    %51 = vector.shape_cast %48 : vector<8x256xf32> to vector<1x8x256xf32>
    tpu.vector_store %arg6[%c0_40, %c0_41, %c0_42], %51 {strides = array<i32>} : memref<2x8x256xf32, #tpu.memory_space<vmem>>, vector<1x8x256xf32>,
    %52 = vector.extract_strided_slice %47 {offsets = [0, 256], sizes = [8, 256], strides = [1, 1]} : vector<8x512xf32> to vector<8x256xf32>
    %c1_43 = arith.constant 1 : index
    %c0_44 = arith.constant 0 : index
    %c0_45 = arith.constant 0 : index
    %53 = vector.load %arg6[%c1_43, %c0_44, %c0_45] : memref<2x8x256xf32, #tpu.memory_space<vmem>>, vector<1x8x256xf32>
    %54 = vector.shape_cast %53 : vector<1x8x256xf32> to vector<8x256xf32>
    %55 = vector.shape_cast %52 : vector<8x256xf32> to vector<1x8x256xf32>
    tpu.vector_store %arg6[%c1_43, %c0_44, %c0_45], %55 {strides = array<i32>} : memref<2x8x256xf32, #tpu.memory_space<vmem>>, vector<1x8x256xf32>,
    return
  }
  func.func @transform_0(%arg0: i32) -> (i32, i32, i32) {
    %c0_i32 = arith.constant 0 : i32
    %c0_i32_0 = arith.constant 0 : i32
    %c0_i32_1 = arith.constant 0 : i32
    return %arg0, %c0_i32, %c0_i32_0 : i32, i32, i32
  }
  func.func @transform_1(%arg0: i32) -> (i32, i32) {
    %c0_i32 = arith.constant 0 : i32
    %c0_i32_0 = arith.constant 0 : i32
    %c0_i32_1 = arith.constant 0 : i32
    return %c0_i32, %c0_i32_0 : i32, i32
  }
  func.func @transform_2(%arg0: i32) -> (i32, i32) {
    %c0_i32 = arith.constant 0 : i32
    %c0_i32_0 = arith.constant 0 : i32
    %c0_i32_1 = arith.constant 0 : i32
    return %c0_i32, %c0_i32_0 : i32, i32
  }
  func.func @transform_3(%arg0: i32) -> (i32, i32) {
    %c0_i32 = arith.constant 0 : i32
    %c0_i32_0 = arith.constant 0 : i32
    %c0_i32_1 = arith.constant 0 : i32
    return %c0_i32, %c0_i32_0 : i32, i32
  }
  func.func @transform_4(%arg0: i32) -> (i32, i32) {
    %c0_i32 = arith.constant 0 : i32
    %c0_i32_0 = arith.constant 0 : i32
    %c0_i32_1 = arith.constant 0 : i32
    return %c0_i32, %c0_i32_0 : i32, i32
  }
  func.func @transform_5(%arg0: i32) -> (i32, i32, i32) {
    %c0_i32 = arith.constant 0 : i32
    %c0_i32_0 = arith.constant 0 : i32
    %c0_i32_1 = arith.constant 0 : i32
    return %arg0, %c0_i32, %c0_i32_0 : i32, i32, i32
  }
}

</mosaic_0001>

<bundles_post_ra>
// kernel: tpu_custom_call.1
= control target key start
LH: loop header
LB: loop body
LE: loop exit
PB: predicated region body
PF: predicated region fallthrough
CT: control target
= control target key end

     0   :  { %10 = vsyncpa [#allocation4], 0  ;;  %s1600_s0 = inlined_call_operand.hbm [shape: bf16[4,8,64], index: 0, kind: input, shape index: {}]   ;;  %s1601_s1 = inlined_call_operand.hbm [shape: bf16[64,256], index: 1, kind: input, shape index: {}]   ;;  %s1602_s2 = inlined_call_operand.hbm [shape: f32[72,512], index: 2, kind: input, shape index: {}]   ;;  %s1603_s3 = inlined_call_operand.vmem [shape: bf16[8,72], index: 3, kind: input, shape index: {}]   ;;  %s1604_s4 = inlined_call_operand.vmem [shape: f32[8,1], index: 4, kind: input, shape index: {}]   ;;  %s1605_s5 = inlined_call_operand.hbm [shape: f32[4,8,256], index: 5, kind: output, shape index: {}]  }
   0x1   :  { %12 = vsyncpa [#allocation4 + $0x1], 0 }
   0x2   :  { %13 = vsyncpa [#allocation7], 0 }
   0x3   :  { %14 = vsyncpa [#allocation5], 0 }
   0x4   :  { %16 = vsyncpa [#allocation5 + $0x1], 0  ;;  %s1230_s18 = smov 0   ;;  %s1232_s19 = smov 0  }
   0x5   :  { %s1234_s20 = smov 0   ;;  %s1236_s21 = smov 0  }
   0x6 LB: > { %s1251_s22 = sadd.s32 4294967295, %s1178_s21   ;;  %s895_s23 = sadd.s32 4294967294, %s1178_s21   ;;  %s1178_s21 = sphi %s1236_s21, %s1627_s21   ;;  %s1174_s20 = sphi %s1234_s20, %s1626_s20   ;;  %s1170_s19 = sphi %s1232_s19, %s1625_s19   ;;  %s1166_s18 = sphi %s1230_s18, %s1624_s18  }
   0x7   : > { %p42_p0 = scmp.ne.s32.totalorder %s1170_s19, %s1166_s18  ;;  %p1606_p1 = scmp.eq.s32.totalorder %s1251_s22, 0 }
   0x8   : > { %p156_p3 = scmp.eq.s32.totalorder %s895_s23, 1  ;;  %p896_p5 = scmp.ge.s32.totalorder %s1178_s21, 1 }
   0x9   : > { %p1260_p4 = por %p1606_p1, %p42_p0  ;;  %p163_p7 = scmp.lt.s32.totalorder %s1178_s21, 3 }
   0xa   : > { %p1265_p6 = por %p156_p3, %p42_p0  ;;  %s1180_s27 = smov [#allocation6]  }
   0xb   : > { %s1610_s24 = scalar_select %p1260_p4, 1, 0 }
   0xc   : > { %s1611_s25 = scalar_select %p1265_p6, 1, 0 }
   0xd   : > { %p1270_p8 = pnand %p896_p5, %p163_p7  ;;  %s175_s28 = sshll.u32 %s1180_s27, 4  ;;  %s176_s28 = int_to_ptr.vmem [resolvable:$true] %s175_s28 }
   0xe   : > { %s1181_s30 = smov [#allocation8]   ;;  %s1041_s7 = scalar_lea.vmem %s176_s28, 1024 }
   0xf   : > { %s1612_s26 = scalar_select %p1270_p8, 1, 0 }
  0x10   : > { %p946_p9 = pneg %p1270_p8  ;;  %s188_s6 = sshll.u32 %s1181_s30, 4  ;;  %s189_s6 = int_to_ptr.vmem [resolvable:$true] %s188_s6 }
  0x11   : > { %p1042_p13 = scmp.ne.s32.totalorder %s176_s28, %s1041_s7  ;;  %p1049_p5 = scmp.lt.s32.totalorder %s176_s28, %s176_s28 }
  0x12   : > { %p1279_p11 = pnand %p946_p9, %p1606_p1  ;;  %p1050_p7 = scmp.lt.s32.totalorder %s1041_s7, %s1041_s7 }
  0x14   : > { %p1032_p12 = pneg %p1279_p11  ;;  %p1051_p10 = por %p1050_p7, %p1049_p5 }
  0x16   : > { %p1044_p0 = pnand %p1042_p13, %p1032_p12 }
  0x18   : > { %p1045_p3 = pneg %p1044_p0 }
  0x1a   : > { %p1052_p9 = pnand %p1051_p10, %p1045_p3 }
  0x1c   : > { %1055 = shalt.err (!%p1052_p9)
}
  0x1d   : > { %s1182_s8 = smov 128   ;;  %s1183_s9 = smov 8  }
  0x1e   : > { %949 = dma.hbm_to_vmem [thread:$0]  (!%p1279_p11), %s1601_s1, 1024, %s176_s28, [#allocation7], %s1182_s8, %s1182_s8, %s1183_s9  }
  0x1f   : > { %s1067_s12 = scalar_lea.vmem %s189_s6, 4608  ;;  %p1075_p2 = scmp.lt.s32.totalorder %s189_s6, %s189_s6 }
  0x20   : > { %p1068_p1 = scmp.ne.s32.totalorder %s189_s6, %s1067_s12  ;;  %p1076_p6 = scmp.lt.s32.totalorder %s1067_s12, %s1067_s12 }
  0x22   : > { %p1070_p13 = pnand %p1068_p1, %p1032_p12  ;;  %p1077_p5 = por %p1076_p6, %p1075_p2 }
  0x24   : > { %p1071_p0 = pneg %p1070_p13 }
  0x26   : > { %p1078_p10 = pnand %p1077_p5, %p1071_p0 }
  0x28   : > { %1081 = shalt.err (!%p1078_p10)
}
  0x29   : > { %s1184_s13 = smov 512   ;;  %s1185_s14 = smov 32  }
  0x2a   : > { %952 = dma.hbm_to_vmem [thread:$0]  (!%p1279_p11), %s1602_s2, 4608, %s189_s6, [#allocation7], %s1184_s13, %s1184_s13, %s1185_s14  }
  0x2b   : > { %s1302_s17 = sadd.s32 1, %s1178_s21   ;;  %s29_s27 = sadd.s32 1, %s1174_s20 }
  0x2c   : > { %s26_s23 = ssub.s32 %s1178_s21, %s1302_s17  ;;  %p36_p2 = scmp.ne.s32.totalorder %s1174_s20, %s1170_s19 }
  0x2d   : > { %p27_p1 = scmp.eq.s32.totalorder %s26_s23, 0  ;;  %p37_p6 = scmp.eq.s32.totalorder %s1178_s21, 0 }
  0x2e   : > { %p1614_p3 = scmp.eq.s32.totalorder %s1251_s22, 1  ;;  %p963_p9 = scmp.lt.s32.totalorder %s1178_s21, 2 }
  0x2f   : > { %s1311_s28 = scalar_select %p27_p1, %s1174_s20, %s29_s27  }
  0x30   : > { %p38_p12 = por %p37_p6, %p36_p2  ;;  %p1315_p7 = por %p1614_p3, %p36_p2 }
  0x31   : > { %s208_s29 = sand.u32 1, %s1174_s20   ;;  %s931_s6 = sshll.u32 %s1178_s21, 7 }
  0x32   : > { %s1615_s30 = scalar_select %p1315_p7, 1, 0 }
  0x33   : > { %s900_s7 = sshll.u32 %s208_s29, 3  ;;  %s1325_s10 = scalar_lea.hbm %s1600_s0, %s931_s6 }
  0x34   : > { %s212_s11 = scalar_lea.vmem [#allocation3], %s900_s7  ;;  %p1329_p11 = pnand %p963_p9, %p38_p12 }
  0x35   : > { %s219_s12 = sshll.u32 %s212_s11, 4  ;;  %s1333_s14 = scalar_lea.sflag [#allocation4], %s208_s29  ;;  %s1327_s12 = int_to_ptr.vmem [resolvable:$true] %s219_s12 }
  0x36   : > { %s1082_s15 = scalar_lea.hbm %s1325_s10, 128  ;;  %p1084_p0 = pneg %p1329_p11 }
  0x37   : > { %p1083_p13 = scmp.ne.s32.totalorder %s1325_s10, %s1082_s15  ;;  %s1087_s27 = scalar_lea.hbm %s1600_s0, 256 }
  0x38   : > { %p1088_p1 = scmp.lt.s32.totalorder %s1325_s10, %s1600_s0  ;;  %p1089_p2 = scmp.lt.s32.totalorder %s1087_s27, %s1082_s15 }
  0x39   : > { %p1085_p5 = pnand %p1084_p0, %p1083_p13 }
  0x3a   : > { %p1090_p6 = por %p1089_p2, %p1088_p1 }
  0x3b   : > { %p1086_p10 = pneg %p1085_p5 }
  0x3d   : > { %p1091_p12 = pnand %p1090_p6, %p1086_p10 }
  0x3f   : > { %1094 = shalt.err (!%p1091_p12)
}
  0x40   : > { %s1095_s29 = scalar_lea.vmem %s1327_s12, 128  ;;  %s1186_s8 = smov [#allocation3]  }
  0x41   : > { %p1096_p3 = scmp.ne.s32.totalorder %s1327_s12, %s1095_s29  ;;  %s1100_s9 = sshll.u32 %s1186_s8, 4  ;;  %s1101_s9 = int_to_ptr.vmem [resolvable:$false] %s1100_s9 }
  0x42   : > { %s1102_s11 = scalar_lea.vmem %s1101_s9, 256  ;;  %p1103_p5 = scmp.lt.s32.totalorder %s1327_s12, %s1101_s9 }
  0x43   : > { %p1098_p9 = pnand %p1096_p3, %p1084_p0  ;;  %p1104_p7 = scmp.lt.s32.totalorder %s1102_s11, %s1095_s29 }
  0x45   : > { %p1099_p13 = pneg %p1098_p9  ;;  %p1105_p4 = por %p1104_p7, %p1103_p5 }
  0x47   : > { %p1106_p8 = pnand %p1105_p4, %p1099_p13 }
  0x49   : > { %1109 = shalt.err (!%p1106_p8)
}
  0x4a   : > { %s1187_s15 = smov 64   ;;  %s1188_s16 = smov 4  }
  0x4b   : > { %956 = dma.hbm_to_vmem [thread:$0]  (!%p1329_p11), %s1325_s10, 128, %s1327_s12, %s1333_s14, %s1187_s15, %s1187_s15, %s1188_s16  }
  0x4c   : > { %p1617_p0 = scmp.ne.s32.totalorder %s1612_s26, 0 }
  0x4d   : > { %s1357_s23 = sand.u32 (!%p1617_p0), 1, %s1170_s19   ;;  %p1618_p4 = scmp.ne.s32.totalorder (!%p1617_p0), %s1610_s24, 0 }
  0x4e   : > { %231 = sbr.rel (%p1617_p0) target bundleno = 695 (0x2b7), region = 40  ;;  %s904_s27 = sshll.u32 (!%p1617_p0), %s1357_s23, 3 }
  0x4f   : > { %s234_s7 = scalar_lea.sflag (!%p1617_p0), [#allocation4], %s1357_s23  ;;  %s1361_s6 = scalar_lea.vmem (!%p1617_p0), [#allocation3], %s904_s27 }
  0x53   : > { %1153 = dma.done.wait (%p1618_p4), %s234_s7, 128  }
  0x54   : > { %1155 = vsyncadd (%p1618_p4), %s234_s7, 4294967168  ;;  %p1619_p8 = scmp.eq.s32.totalorder %s1251_s22, 0 }
  0x56   : > { %1157 = dma.done.wait (%p1619_p8), [#allocation7], 5632   ;;  %p1620_p7 = pmov %p1619_p8 }
  0x57   : > { %v1189_v0 = vmov 0   ;;  %v1018_v1 = vld [vmem:[#allocation6 + $0x34] ss:$8 sps:$4 sm:$0xff]   ;;  %v1020_v2 = vld [vmem:[#allocation6 + $0x30] ss:$8 sps:$4 sm:$0xff]   ;;  %vm324_vm0 = vcmask 523264   ;;  %v423_v20 = vlaneseq }
  0x58   : > { %1159 = vsyncadd (%p1620_p7), [#allocation7], 4294961664  ;;  %360 = vmatprep.mubr.bf16.mxu0 %v1189_v0  ;;  %406 = vmatprep.mubr.bf16.mxu1 %v1189_v0  ;;  %v1021_v3 = vld [vmem:[#allocation6 + $0x24] ss:$8 sps:$4 sm:$0xff]   ;;  %v1023_v4 = vld [vmem:[#allocation6 + $0x20] ss:$8 sps:$4 sm:$0xff]  }
  0x59   : > { %1017 = vset.pattern.permute.xlu0 %v1189_v0  ;;  %336 = vmatprep.subr.bf16.mxu0 %v1018_v1  ;;  %v1024_v5 = vld [vmem:[#allocation6 + $0x14] ss:$8 sps:$4 sm:$0xff]   ;;  %v1026_v6 = vld [vmem:[#allocation6 + $0x10] ss:$8 sps:$4 sm:$0xff]   ;;  %v1027_v7 = vld [vmem:[#allocation6 + $0x4] ss:$8 sps:$4 sm:$0xff]  }
  0x5a   : > { %382 = vmatprep.subr.bf16.mxu1 %v1018_v1  ;;  %337 = vmatpush1.bf16.msra.mxu0 %v1020_v2  ;;  %v1029_v8 = vld [vmem:[#allocation6] ss:$8 sps:$4 sm:$0xff]   ;;  %v283_v9 = vld [vmem:[%s1361_s6] sm:$0xf]  ;;  %v917_v10 = vld [vmem:[%s1361_s6 + $0x4] sm:$0xf] }
  0x5b   : > { %383 = vmatpush1.bf16.msra.mxu1 %v1020_v2  ;;  %338 = vmatprep.subr.bf16.mxu0 %v1021_v3  ;;  %s1190_s24 = smov 111   ;;  %s1191_s26 = smov 113   ;;  %v678_v19 = vld [vmem:[%s1604_s4] sm:$0xff]  ;;  %v1424_v21 = vand.u32 127, %v423_v20  ;;  %v612_v25 = vld [vmem:[#allocation8 + $0x118] sm:$0xff]  ;;  %vm688_vm2 = vcmask 1043456  }
  0x5c   : > { %384 = vmatprep.subr.bf16.mxu1 %v1021_v3  ;;  %s1192_s10 = smov 112   ;;  %s1193_s12 = smov 127   ;;  %v611_v24 = vld [vmem:[#allocation8 + $0x110] sm:$0xff]  ;;  %v562_v42 = vld [vmem:[#allocation8 + $0xd8] sm:$0xff]  ;;  %v609_v20 = vld [vmem:[#allocation8 + $0x100] sm:$0xff]  ;;  %vm684_vm10 = vcmask 588800  }
  0x5d   : > { %s1194_s13 = smov 15   ;;  %s1195_s14 = smov 1   ;;  %vm604_vm1 = vcmp.lt.s32.totalorder %v1424_v21, 111  ;;  %vm554_vm3 = vcmp.lt.s32.totalorder %v1424_v21, 113  ;;  %v561_v41 = vld [vmem:[#allocation8 + $0xd0] sm:$0xff]  ;;  %v587_v46 = vld [vmem:[#allocation8 + $0xf8] sm:$0xff] }
  0x5e   : > { %339 = vmatpush1.bf16.msra.mxu0 %v1023_v4  ;;  %s1196_s29 = smov 17   ;;  %s1197_s8 = smov 16   ;;  %v586_v45 = vld [vmem:[#allocation8 + $0xf0] sm:$0xff]  ;;  %vm579_vm4 = vcmp.lt.s32.totalorder %v1424_v21, 112  ;;  %v537_v60 = vld [vmem:[#allocation8 + $0xb8] sm:$0xff]  ;;  %vm529_vm5 = vcmp.lt.s32.totalorder %v1424_v21, 127 }
  0x5f   : > { %385 = vmatpush1.bf16.msra.mxu1 %v1023_v4  ;;  %340 = vmatprep.subr.bf16.mxu0 %v1024_v5  ;;  %v536_v59 = vld [vmem:[#allocation8 + $0xb0] sm:$0xff]  ;;  %vm500_vm6 = vcmp.lt.s32.totalorder %v1424_v21, 1  ;;  %vm475_vm7 = vcmp.lt.s32.totalorder %v1424_v21, 15  ;;  %vm425_vm8 = vcmp.lt.s32.totalorder %v1424_v21, 17  ;;  %vm450_vm9 = vcmp.lt.s32.totalorder %v1424_v21, 16  ;;  %s907_s27 = sshll.u32 %s1357_s23, 5 }
  0x60   : > { %386 = vmatprep.subr.bf16.mxu1 %v1024_v5  ;;  %s271_s7 = scalar_lea.vmem [#allocation9], %s907_s27  ;;  %p1621_p10 = scmp.ne.s32.totalorder %s1615_s30, 0 }
  0x61   : > { %s803_s6 = sshll.u32 %s271_s7, 4  ;;  %s1551_s6 = int_to_ptr.vmem [resolvable:$true] %s803_s6 }
  0x62   : > { %341 = vmatpush1.bf16.msra.mxu0 %v1026_v6 }
  0x63   : > { %387 = vmatpush1.bf16.msra.mxu1 %v1026_v6  ;;  %342 = vmatprep.subr.bf16.mxu0 %v1027_v7 }
  0x64   : > { %388 = vmatprep.subr.bf16.mxu1 %v1027_v7 }
  0x66   : > { %343 = vmatpush1.bf16.msra.mxu0 %v1029_v8 }
  0x67   : > { %389 = vmatpush1.bf16.msra.mxu1 %v1029_v8 }
  0x69   : > { %916 = vmatmul.mubr.msk.bf16.vlgmr.msra.gmra.mxu0 %vm324_vm0, %v283_v9 }
  0x6a   : > { %918 = vmatmul.mubr.msk.bf16.vlgmr.msra.gmra.mxu1 %vm324_vm0, %v917_v10  ;;  %733 = vmatprep.mubr.bf16.mxu0 %v1189_v0 }
  0x6b   : > { %774 = vmatprep.mubr.bf16.mxu1 %v1189_v0 }
 0x129   : > { %v1373_v11 = vpop.f32.mrf.mxu0 }
 0x12a   : > { %v1375_v12 = vpop.f32.mrf.mxu1  ;;  %596 = vrot.lane.b32.xlu0 %v1373_v11, %s1190_s24 }
 0x12b   : > { %600 = vrot.lane.b32.xlu1 %v1375_v12, %s1190_s24  ;;  %v1381_v13 = vpop.f32.mrf.mxu0 }
 0x12c   : > { %v1383_v14 = vpop.f32.mrf.mxu1 }
 0x12d   : > { %v366_v15 = vpop.f32.mrf.mxu0 }
 0x12e   : > { %v412_v16 = vpop.f32.mrf.mxu1  ;;  %546 = vrot.lane.b32.xlu0 %v1373_v11, %s1191_s26  ;;  %v585_v15 = vld [vmem:[#allocation8 + $0xe8] sm:$0xff] }
 0x12f   : > { %602 = vrot.lane.b32.xlu1 %v1383_v14, %s1190_s24  ;;  %v367_v17 = vpop.f32.mrf.mxu0 }
 0x130   : > { %v413_v18 = vpop.f32.mrf.mxu1  ;;  %v507_v17 = vld [vmem:[#allocation8 + $0x70] sm:$0xff] }
 0x132   : > { %550 = vrot.lane.b32.xlu0 %v1375_v12, %s1191_s26 }
 0x133   : > { %548 = vrot.lane.b32.xlu1 %v1381_v13, %s1191_s26 }
 0x136   : > { %571 = vrot.lane.b32.xlu0 %v1373_v11, %s1192_s10 }
 0x137   : > { %552 = vrot.lane.b32.xlu1 %v1383_v14, %s1191_s26 }
 0x13a   : > { %575 = vrot.lane.b32.xlu0 %v1375_v12, %s1192_s10 }
 0x13b   : > { %573 = vrot.lane.b32.xlu1 %v1381_v13, %s1192_s10 }
 0x13e   : > { %521 = vrot.lane.b32.xlu0 %v1373_v11, %s1193_s12 }
 0x13f   : > { %577 = vrot.lane.b32.xlu1 %v1383_v14, %s1192_s10 }
 0x142   : > { %525 = vrot.lane.b32.xlu0 %v1375_v12, %s1193_s12 }
 0x143   : > { %523 = vrot.lane.b32.xlu1 %v1381_v13, %s1193_s12 }
 0x146   : > { %467 = vrot.lane.b32.xlu0 %v1373_v11, %s1194_s13 }
 0x147   : > { %527 = vrot.lane.b32.xlu1 %v1383_v14, %s1193_s12 }
 0x14a   : > { %471 = vrot.lane.b32.xlu0 %v1375_v12, %s1194_s13 }
 0x14b   : > { %469 = vrot.lane.b32.xlu1 %v1381_v13, %s1194_s13 }
 0x14e   : > { %492 = vrot.lane.b32.xlu0 %v1373_v11, %s1195_s14 }
 0x14f   : > { %473 = vrot.lane.b32.xlu1 %v1383_v14, %s1194_s13  ;;  %s1110_s13 = scalar_lea.vmem %s1551_s6, 512 }
 0x150   : > { %p1111_p11 = scmp.ne.s32.totalorder %s1551_s6, %s1110_s13 }
 0x152   : > { %496 = vrot.lane.b32.xlu0 %v1375_v12, %s1195_s14  ;;  %p1112_p1 = pnand %p1111_p11, %p1621_p10 }
 0x153   : > { %494 = vrot.lane.b32.xlu1 %v1381_v13, %s1195_s14 }
 0x154   : > { %p1113_p2 = pneg %p1112_p1 }
 0x156   : > { %598 = vrot.lane.b32.xlu0 %v1381_v13, %s1190_s24  ;;  %s933_s24 = sshll.u32 %s1251_s22, 9  ;;  %s789_s22 = scalar_lea.sflag [#allocation5], %s1357_s23 }
 0x157   : > { %498 = vrot.lane.b32.xlu1 %v1383_v14, %s1195_s14  ;;  %s1556_s12 = scalar_lea.hbm %s1605_s5, %s933_s24  ;;  %s1198_s14 = smov [#allocation9]  }
 0x15a   : > { %415 = vrot.lane.b32.xlu0 %v1373_v11, %s1196_s29 }
 0x15b   : > { %417 = vrot.lane.b32.xlu1 %v1381_v13, %s1196_s29 }
 0x15e   : > { %419 = vrot.lane.b32.xlu0 %v1375_v12, %s1196_s29 }
 0x15f   : > { %421 = vrot.lane.b32.xlu1 %v1383_v14, %s1196_s29  ;;  %s1114_s29 = sshll.u32 %s1198_s14, 4  ;;  %s1115_s29 = int_to_ptr.vmem [resolvable:$false] %s1114_s29 }
 0x160   : > { %s1116_s9 = scalar_lea.vmem %s1115_s29, 1024  ;;  %p1117_p6 = scmp.lt.s32.totalorder %s1551_s6, %s1115_s29 }
 0x161   : > { %p1118_p12 = scmp.lt.s32.totalorder %s1116_s9, %s1110_s13 }
 0x162   : > { %442 = vrot.lane.b32.xlu0 %v1373_v11, %s1197_s8 }
 0x163   : > { %444 = vrot.lane.b32.xlu1 %v1381_v13, %s1197_s8  ;;  %p1119_p3 = por %p1118_p12, %p1117_p6 }
 0x165   : > { %p1120_p9 = pnand %p1119_p3, %p1113_p2 }
 0x166   : > { %446 = vrot.lane.b32.xlu0 %v1375_v12, %s1197_s8 }
 0x167   : > { %448 = vrot.lane.b32.xlu1 %v1383_v14, %s1197_s8 }
 0x16a   : > { %681 = vperm.xlu0 %1017, %v678_v19   ;;  %v508_v19 = vld [vmem:[#allocation8 + $0x78] sm:$0xff] }
 0x19c   : > { %v1428_v23 = vpop.permute.xlu0 %596 }
 0x19d   : > { %v1426_v22 = vpop.permute.xlu1 %600 }
 0x1a0   : > { %v1431_v27 = vpop.permute.xlu0 %546 }
 0x1a1   : > { %v603_v26 = vpop.permute.xlu1 %602 }
 0x1a2   : > { %v605_v28 = vsel %vm604_vm1, %v1426_v22, %v603_v26  ;;  %v608_v29 = vsel %vm604_vm1, %v603_v26, %v1428_v23 }
 0x1a3   : > { %v615_v30 = vmul.f32 %v611_v24, %v605_v28  ;;  %v616_v31 = vmul.f32 %v612_v25, %v608_v29  ;;  %v610_v24 = vld [vmem:[#allocation8 + $0x108] sm:$0xff]  ;;  %v482_v29 = vld [vmem:[#allocation8 + $0x50] sm:$0xff] }
 0x1a4   : > { %v551_v34 = vpop.permute.xlu0 %550 }
 0x1a5   : > { %v676_v32 = vpack.c.bf16 %v615_v30, %v615_v30  ;;  %v677_v33 = vpack.c.bf16 %v616_v31, %v616_v31  ;;  %v1439_v35 = vpop.permute.xlu1 %548 }
 0x1a6   : > { %v556_v25 = vsel %vm554_vm3, %v1439_v35, %v551_v34 }
 0x1a7   : > { %921 = vmatprep.subr.msk.bf16.mxu1 %vm688_vm2, %v677_v33  ;;  %v696_v36 = vsel %vm688_vm2, %v676_v32, 0  ;;  %v560_v33 = vld [vmem:[#allocation8 + $0xc8] sm:$0xff] }
 0x1a8   : > { %749 = vmatpush1.bf16.msra.mxu1 %v696_v36  ;;  %v572_v37 = vpop.permute.xlu0 %571 }
 0x1a9   : > { %v553_v38 = vpop.permute.xlu1 %552 }
 0x1aa   : > { %v555_v43 = vsel %vm554_vm3, %v551_v34, %v553_v38  ;;  %v558_v44 = vsel %vm554_vm3, %v553_v38, %v1431_v27 }
 0x1ab   : > { %v565_v51 = vmul.f32 %v561_v41, %v555_v43  ;;  %v566_v52 = vmul.f32 %v562_v42, %v558_v44  ;;  %v557_v44 = vsel %vm554_vm3, %v1431_v27, %v1439_v35 }
 0x1ac   : > { %v576_v39 = vpop.permute.xlu0 %575 }
 0x1ad   : > { %v574_v40 = vpop.permute.xlu1 %573 }
 0x1ae   : > { %v581_v16 = vsel %vm579_vm4, %v574_v40, %v576_v39  ;;  %v582_v26 = vsel %vm579_vm4, %v572_v37, %v574_v40 }
 0x1af   : > { %v589_v28 = vmul.f32 %v585_v15, %v581_v16  ;;  %v480_v15 = vld [vmem:[#allocation8 + $0x40] sm:$0xff] }
 0x1b0   : > { %v1450_v47 = vpop.permute.xlu0 %521 }
 0x1b1   : > { %v578_v48 = vpop.permute.xlu1 %577 }
 0x1b2   : > { %v580_v49 = vsel %vm579_vm4, %v576_v39, %v578_v48  ;;  %v583_v50 = vsel %vm579_vm4, %v578_v48, %v572_v37  ;;  %v584_v39 = vld [vmem:[#allocation8 + $0xe0] sm:$0xff] }
 0x1b3   : > { %v590_v53 = vmul.f32 %v586_v45, %v580_v49  ;;  %v591_v54 = vmul.f32 %v587_v46, %v583_v50  ;;  %v535_v45 = vld [vmem:[#allocation8 + $0xa8] sm:$0xff]  ;;  %v559_v48 = vld [vmem:[#allocation8 + $0xc0] sm:$0xff]  ;;  %v564_v49 = vmul.f32 %v560_v33, %v556_v25  ;;  %v432_v25 = vld [vmem:[#allocation8 + $0x10] sm:$0xff] }
 0x1b4   : > { %v526_v56 = vpop.permute.xlu0 %525  ;;  %v458_v33 = vld [vmem:[#allocation8 + $0x38] sm:$0xff] }
 0x1b5   : > { %v672_v55 = vpack.c.bf16 %v590_v53, %v565_v51  ;;  %v1456_v57 = vpop.permute.xlu1 %523  ;;  %v673_v58 = vpack.c.bf16 %v591_v54, %v566_v52  ;;  %v588_v54 = vmul.f32 %v584_v39, %v582_v26  ;;  %v433_v26 = vld [vmem:[#allocation8 + $0x18] sm:$0xff] }
 0x1b6   : > { %v531_v46 = vsel %vm529_vm5, %v1456_v57, %v526_v56  ;;  %v532_v27 = vsel %vm529_vm5, %v1450_v47, %v1456_v57 }
 0x1b7   : > { %750 = vmatprep.subr.bf16.mxu1 %v673_v58  ;;  %v539_v58 = vmul.f32 %v535_v45, %v531_v46 }
 0x1b8   : > { %751 = vmatpush1.bf16.msra.mxu1 %v672_v55  ;;  %v1459_v61 = vpop.permute.xlu0 %467  ;;  %v534_v55 = vld [vmem:[#allocation8 + $0xa0] sm:$0xff] }
 0x1b9   : > { %v528_v62 = vpop.permute.xlu1 %527 }
 0x1ba   : > { %v530_v63 = vsel %vm529_vm5, %v526_v56, %v528_v62  ;;  %v533_v0 = vsel %vm529_vm5, %v528_v62, %v1450_v47  ;;  %v506_v62 = vld [vmem:[#allocation8 + $0x68] sm:$0xff] }
 0x1bb   : > { %v540_v1 = vmul.f32 %v536_v59, %v530_v63  ;;  %v541_v2 = vmul.f32 %v537_v60, %v533_v0  ;;  %v671_v59 = vpack.c.bf16 %v589_v28, %v564_v49  ;;  %v563_v60 = vmul.f32 %v559_v48, %v557_v44 }
 0x1bc   : > { %v472_v4 = vpop.permute.xlu0 %471  ;;  %v538_v0 = vmul.f32 %v534_v55, %v532_v27 }
 0x1bd   : > { %v668_v3 = vpack.c.bf16 %v540_v1, %v1375_v12  ;;  %v1467_v5 = vpop.permute.xlu1 %469  ;;  %v669_v6 = vpack.c.bf16 %v541_v2, %v1383_v14  ;;  %v483_v12 = vld [vmem:[#allocation8 + $0x58] sm:$0xff]  ;;  %v670_v57 = vpack.c.bf16 %v588_v54, %v563_v60  ;;  %v481_v2 = vld [vmem:[#allocation8 + $0x48] sm:$0xff] }
 0x1be   : > { %v477_v30 = vsel %vm475_vm7, %v1467_v5, %v472_v4 }
 0x1bf   : > { %752 = vmatprep.subr.bf16.mxu1 %v669_v6 }
 0x1c0   : > { %753 = vmatpush1.bf16.msra.mxu1 %v668_v3  ;;  %v1470_v7 = vpop.permute.xlu0 %492  ;;  %v478_v3 = vsel %vm475_vm7, %v1459_v61, %v1467_v5  ;;  %v456_v5 = vld [vmem:[#allocation8 + $0x28] sm:$0xff] }
 0x1c1   : > { %v1472_v8 = vpop.permute.xlu1 %473 }
 0x1c2   : > { %v476_v18 = vsel %vm475_vm7, %v472_v4, %v1472_v8  ;;  %v505_v4 = vld [vmem:[#allocation8 + $0x60] sm:$0xff]  ;;  %v479_v16 = vsel %vm475_vm7, %v1472_v8, %v1459_v61 }
 0x1c3   : > { %v487_v40 = vmul.f32 %v483_v12, %v476_v18  ;;  %v666_v12 = vpack.c.bf16 %v538_v0, %v1373_v11  ;;  %v484_v8 = vmul.f32 %v480_v15, %v479_v16 }
 0x1c4   : > { %v497_v9 = vpop.permute.xlu0 %496 }
 0x1c5   : > { %v495_v10 = vpop.permute.xlu1 %494 }
 0x1c6   : > { %v502_v14 = vsel %vm500_vm6, %v495_v10, %v497_v9  ;;  %v503_v63 = vsel %vm500_vm6, %v1470_v7, %v495_v10  ;;  %v667_v10 = vpack.c.bf16 %v539_v58, %v1381_v13 }
 0x1c7   : > { %v511_v36 = vmul.f32 %v507_v17, %v502_v14  ;;  %v485_v17 = vmul.f32 %v481_v2, %v478_v3 }
 0x1c8   : > { %v599_v32 = vpop.permute.xlu0 %598 }
 0x1c9   : > { %v499_v31 = vpop.permute.xlu1 %498  ;;  %v606_v34 = vsel %vm604_vm1, %v599_v32, %v1426_v22  ;;  %v607_v37 = vsel %vm604_vm1, %v1428_v23, %v599_v32  ;;  %v486_v22 = vmul.f32 %v482_v29, %v477_v30  ;;  %v457_v32 = vld [vmem:[#allocation8 + $0x30] sm:$0xff] }
 0x1ca   : > { %v501_v38 = vsel %vm500_vm6, %v497_v9, %v499_v31  ;;  %v613_v42 = vmul.f32 %v609_v20, %v607_v37  ;;  %v614_v43 = vmul.f32 %v610_v24, %v606_v34  ;;  %v504_v6 = vsel %vm500_vm6, %v499_v31, %v1470_v7  ;;  %v430_v20 = vld [vmem:[#allocation8] sm:$0xff] }
 0x1cb   : > { %v512_v41 = vmul.f32 %v508_v19, %v501_v38  ;;  %v664_v35 = vpack.c.bf16 %v511_v36, %v486_v22  ;;  %v510_v9 = vmul.f32 %v506_v62, %v503_v63  ;;  %v509_v14 = vmul.f32 %v505_v4, %v504_v6  ;;  %v431_v19 = vld [vmem:[#allocation8 + $0x8] sm:$0xff]  ;;  %v455_v31 = vld [vmem:[#allocation8 + $0x20] sm:$0xff] }
 0x1cc   : > { %v674_v50 = vpack.c.bf16 %v613_v42, %v613_v42  ;;  %v675_v23 = vpack.c.bf16 %v614_v43, %v614_v43  ;;  %v416_v52 = vpop.permute.xlu0 %415 }
 0x1cd   : > { %v418_v51 = vpop.permute.xlu1 %417  ;;  %v665_v53 = vpack.c.bf16 %v512_v41, %v487_v40  ;;  %v663_v30 = vpack.c.bf16 %v510_v9, %v485_v17  ;;  %v662_v36 = vpack.c.bf16 %v509_v14, %v484_v8 }
 0x1ce   : > { %919 = vmatprep.subr.msk.bf16.mxu0 %vm688_vm2, %v675_v23  ;;  %v690_v56 = vsel %vm688_vm2, %v674_v50, 0  ;;  %v428_v13 = vsel %vm425_vm8, %v416_v52, %v418_v51 }
 0x1cf   : > { %754 = vmatprep.subr.bf16.mxu1 %v665_v53  ;;  %708 = vmatpush1.bf16.msra.mxu0 %v690_v56  ;;  %v435_v38 = vmul.f32 %v431_v19, %v428_v13 }
 0x1d0   : > { %755 = vmatpush1.bf16.msra.mxu1 %v664_v35  ;;  %709 = vmatprep.subr.bf16.mxu0 %v671_v59  ;;  %v420_v47 = vpop.permute.xlu0 %419 }
 0x1d1   : > { %v422_v1 = vpop.permute.xlu1 %421  ;;  %v427_v61 = vsel %vm425_vm8, %v418_v51, %v420_v47  ;;  %v621_v51 = vld [vmem:[%s1603_s3] sm:$0xf] }
 0x1d2   : > { %v429_v24 = vsel %vm425_vm8, %v422_v1, %v416_v52  ;;  %v426_v28 = vsel %vm425_vm8, %v420_v47, %v422_v1  ;;  %v436_v37 = vmul.f32 %v432_v25, %v427_v61 }
 0x1d3   : > { %710 = vmatpush1.bf16.msra.mxu0 %v670_v57  ;;  %v434_v34 = vmul.f32 %v430_v20, %v429_v24  ;;  %v437_v41 = vmul.f32 %v433_v26, %v426_v28 }
 0x1d4   : > { %711 = vmatprep.subr.bf16.mxu0 %v667_v10  ;;  %v443_v18 = vpop.permute.xlu0 %442 }
 0x1d5   : > { %v445_v7 = vpop.permute.xlu1 %444 }
 0x1d6   : > { %v453_v11 = vsel %vm450_vm9, %v443_v18, %v445_v7 }
 0x1d7   : > { %v460_v29 = vmul.f32 %v456_v5, %v453_v11  ;;  %712 = vmatpush1.bf16.msra.mxu0 %v666_v12 }
 0x1d8   : > { %713 = vmatprep.subr.bf16.mxu0 %v663_v30  ;;  %v447_v40 = vpop.permute.xlu0 %446 }
 0x1d9   : > { %v449_v39 = vpop.permute.xlu1 %448  ;;  %v452_v44 = vsel %vm450_vm9, %v445_v7, %v447_v40  ;;  %v659_v48 = vpack.c.bf16 %v460_v29, %v435_v38 }
 0x1da   : > { %v454_v42 = vsel %vm450_vm9, %v449_v39, %v443_v18  ;;  %v451_v43 = vsel %vm450_vm9, %v447_v40, %v449_v39  ;;  %v461_v46 = vmul.f32 %v457_v32, %v452_v44 }
 0x1db   : > { %v459_v45 = vmul.f32 %v455_v31, %v454_v42  ;;  %v462_v22 = vmul.f32 %v458_v33, %v451_v43  ;;  %714 = vmatpush1.bf16.msra.mxu0 %v662_v36 }
 0x1dc   : > { %v660_v50 = vpack.c.bf16 %v461_v46, %v436_v37  ;;  %715 = vmatprep.subr.bf16.mxu0 %v659_v48 }
 0x1dd   : > { %v658_v49 = vpack.c.bf16 %v459_v45, %v434_v34  ;;  %v661_v23 = vpack.c.bf16 %v462_v22, %v437_v41 }
 0x1df   : > { %756 = vmatprep.subr.bf16.mxu1 %v661_v23  ;;  %716 = vmatpush1.bf16.msra.mxu0 %v658_v49 }
 0x1e0   : > { %757 = vmatpush1.bf16.msra.mxu1 %v660_v50 }
 0x1e2   : > { %920 = vmatmul.mubr.msk.bf16.vlgmr.msra.gmra.mxu0 %vm684_vm10, %v621_v51 }
 0x1e3   : > { %922 = vmatmul.mubr.msk.bf16.vlgmr.msra.gmra.mxu1 %vm684_vm10, %v621_v51 }
 0x1e5   : > { %v682_v21 = vpop.permute.xlu0 %681 }
 0x2a2   : > { %v735_v53 = vpop.f32.mrf.mxu0 }
 0x2a3   : > { %v776_v52 = vpop.f32.mrf.mxu1  ;;  %v736_v55 = vadd.f32 %v735_v53, %v682_v21 }
 0x2a4   : > { %v777_v54 = vadd.f32 %v776_v52, %v682_v21  ;;  %v737_v27 = vpop.f32.mrf.mxu0 }
 0x2a5   : > { %v778_v35 = vpop.f32.mrf.mxu1  ;;  %783 = vst [vmem:[%s271_s7] sm:$0xff] %v736_v55  ;;  %v738_v58 = vadd.f32 %v737_v27, %v682_v21 }
 0x2a6   : > { %923 = vst [vmem:[%s271_s7 + $0x10] sm:$0xff] %v777_v54  ;;  %v779_v56 = vadd.f32 %v778_v35, %v682_v21  ;;  %v739_v59 = vpop.f32.mrf.mxu0 }
 0x2a7   : > { %v780_v60 = vpop.f32.mrf.mxu1  ;;  %784 = vst [vmem:[%s271_s7 + $0x8] sm:$0xff] %v738_v58 }
 0x2a8   : > { %924 = vst [vmem:[%s271_s7 + $0x18] sm:$0xff] %v779_v56  ;;  %v740_v62 = vpop.f32.mrf.mxu0 }
 0x2a9   : > { %v781_v63 = vpop.f32.mrf.mxu1 }
 0x2aa   : > { %1123 = shalt.err (!%p1120_p9)
}
 0x2ab   : > { %s1124_s11 = scalar_lea.hbm %s1556_s12, 512  ;;  %s1128_s27 = scalar_lea.hbm %s1605_s5, 1024 }
 0x2ac   : > { %p1125_p13 = scmp.ne.s32.totalorder %s1556_s12, %s1124_s11  ;;  %p1129_p4 = scmp.lt.s32.totalorder %s1556_s12, %s1605_s5 }
 0x2ad   : > { %p1130_p8 = scmp.lt.s32.totalorder %s1128_s27, %s1124_s11 }
 0x2ae   : > { %p1126_p5 = pnand %p1125_p13, %p1621_p10 }
 0x2af   : > { %p1131_p7 = por %p1130_p8, %p1129_p4 }
 0x2b0   : > { %p1127_p0 = pneg %p1126_p5 }
 0x2b2   : > { %p1132_p11 = pnand %p1131_p7, %p1127_p0 }
 0x2b4   : > { %1135 = shalt.err (!%p1132_p11)
}
 0x2b5   : > { %s1199_s26 = smov 256  }
 0x2b6   : > { %944 = dma.vmem_to_hbm [thread:$0]  (%p1621_p10), %s1551_s6, 512, %s1556_s12, %s789_s22, %s1199_s26, %s1199_s26, %s1197_s8  }
 0x2b7 PF: > { %s818_s10 = sand.u32 1, %s1166_s18   ;;  %p1622_p1 = scmp.ne.s32.totalorder %s1611_s25, 0 }
 0x2b8   : > { %p1623_p2 = scmp.ge.s32.totalorder %s1178_s21, 2  ;;  %s819_s13 = scalar_lea.sflag [#allocation5], %s818_s10 }
 0x2ba   : > { %p958_p6 = pnand %p1623_p2, %p1622_p1 }
 0x2bc   : > { %p959_p12 = pneg %p958_p6 }
 0x2be   : > { %1161 = dma.done.wait (%p959_p12), %s819_s13, 512  }
 0x2bf   : > { %1163 = vsyncadd (%p959_p12), %s819_s13, 4294966784  ;;  %p19_p3 = scmp.ge.s32.totalorder %s1302_s17, 4   ;;  %s1624_s18 = smov %s1170_s19 }
 0x2c0   : > { %s1625_s19 = smov %s1174_s20  ;;  %s1626_s20 = smov %s1311_s28 }
 0x2c1   : > { %s1627_s21 = smov %s1302_s17  ;;  %21 = sbr.rel (!%p19_p3) target bundleno = 6 (0x6), region = 95 }
 0x2c6   :  { %824 = vsyncpa [#allocation4], 1 }
 0x2c7   :  { %826 = vsyncpa [#allocation4 + $0x1], 1 }
 0x2c8   :  { %827 = vsyncpa [#allocation7], 1 }
 0x2c9   :  { %828 = vsyncpa [#allocation5], 1 }
 0x2ca   :  { %830 = vsyncpa [#allocation5 + $0x1], 1 }

</bundles_post_ra>
